<compile_context>
chip_gen: v7x
topology: tpu7x:2x2x1
jax: 0.10.0
libtpu: 0.0.40
codegen_flags: <defaults>
</compile_context>

<pallas_src>
import jax
import jax.numpy as jnp
from jax.experimental import pallas as pl
from jax.experimental.pallas import tpu as pltpu


# ----------------------- model hyper-parameters (small) ----------------------
SELF_OBS_DIM = 18          # self-observation dims skipped by the slice
NEIGHBOR_OBS_DIM = 6       # per-neighbor obs dims
NUM_USE_NEIGHBOR_OBS = 6   # neighbors used
ALL_NEIGHBOR_OBS_SIZE = NEIGHBOR_OBS_DIM * NUM_USE_NEIGHBOR_OBS   # 36
EXTRA_OBS_DIM = 4          # trailing obs dims (ignored by this encoder)
OBS_DIM = SELF_OBS_DIM + ALL_NEIGHBOR_OBS_SIZE + EXTRA_OBS_DIM    # 58
NEIGHBOR_HIDDEN_SIZE = 128
BATCH = 200                # deliberately not a tile multiple (tests padding)
TILE_B_DEFAULT = 256       # 128-multiple: fills MXU rows; 256 suits v6e/v7x


# --------------------------------- kernel ------------------------------------
def neighborhood_mlp_kernel(obs_ref, w1_ref, b1_ref, w2_ref, b2_ref,
                            w3_ref, b3_ref, out_ref):
    # obs_ref: (TILE_B, OBS_DIM) bf16; w*_ref bf16; b*_ref f32 (1, H).
    # fc1 + tanh  (w1 is zero-padded to full obs width -> no lane slice needed)
    h = jnp.dot(obs_ref[...], w1_ref[...],
                preferred_element_type=jnp.float32) + b1_ref[...]
    h = jnp.tanh(h)
    # fc2 + tanh
    h = jnp.dot(h.astype(jnp.bfloat16), w2_ref[...],
                preferred_element_type=jnp.float32) + b2_ref[...]
    h = jnp.tanh(h)
    # fc3 + tanh
    h = jnp.dot(h.astype(jnp.bfloat16), w3_ref[...],
                preferred_element_type=jnp.float32) + b3_ref[...]
    h = jnp.tanh(h)
    out_ref[...] = h.astype(out_ref.dtype)


# -------------------------------- wrapper ------------------------------------
def quad_neighborhood_encoder_mlp(obs, params, tile_b=TILE_B_DEFAULT):
    """obs: (B, OBS_DIM) float32. Returns (B, NEIGHBOR_HIDDEN_SIZE) float32.

    params holds the logical (PyTorch-equivalent) weights:
      w1 (36, H), b1 (1, H), w2 (H, H), b2 (1, H), w3 (H, H), b3 (1, H)
    """
    w1, b1, w2, b2, w3, b3 = params
    B, obs_dim = obs.shape
    H = w1.shape[1]

    # Zero-pad fc1 weight to full obs width so the kernel consumes the whole
    # obs block (exact zeros for self/extra obs columns -> identical result).
    w1_full = jnp.zeros((obs_dim, H), jnp.float32)
    w1_full = w1_full.at[SELF_OBS_DIM:SELF_OBS_DIM + ALL_NEIGHBOR_OBS_SIZE].set(w1)

    # bf16 MXU operands (f32 accumulate happens inside the kernel).
    w1_bf = w1_full.astype(jnp.bfloat16)
    w2_bf = w2.astype(jnp.bfloat16)
    w3_bf = w3.astype(jnp.bfloat16)

    # Pad batch to a tile multiple; padded rows are sliced off at the end.
    n_tiles = pl.cdiv(B, tile_b)
    b_padded = n_tiles * tile_b
    if b_padded != B:
        obs = jnp.pad(obs, ((0, b_padded - B), (0, 0)))
    obs_bf = obs.astype(jnp.bfloat16)

    # Weights/biases stay VMEM-resident across grid steps (constant index_map).
    pinned = lambda a: pl.BlockSpec(a.shape, lambda i: (0,) * a.ndim)

    cost = pl.CostEstimate(
        flops=2 * b_padded * (obs_dim * H + 2 * H * H),
        transcendentals=3 * b_padded * H,
        bytes_accessed=(obs_bf.size * 2
                        + (w1_bf.size + w2_bf.size + w3_bf.size) * 2
                        + (b1.size + b2.size + b3.size) * 4
                        + b_padded * H * 4),
    )

    out = pl.pallas_call(
        neighborhood_mlp_kernel,
        out_shape=jax.ShapeDtypeStruct((b_padded, H), jnp.float32),
        grid=(n_tiles,),
        in_specs=[
            pl.BlockSpec((tile_b, obs_dim), lambda i: (i, 0)),   # obs tile
            pinned(w1_bf), pinned(b1),
            pinned(w2_bf), pinned(b2),
            pinned(w3_bf), pinned(b3),
        ],
        out_specs=pl.BlockSpec((tile_b, H), lambda i: (i, 0)),
        compiler_params=pltpu.CompilerParams(
            dimension_semantics=("parallel",)),
        cost_estimate=cost,
    )(obs_bf, w1_bf, b1, w2_bf, b2, w3_bf, b3)

    return out[:B]


# ----------------------- deterministic parameter init ------------------------
def init_params(key):
    din = ALL_NEIGHBOR_OBS_SIZE
    h = NEIGHBOR_HIDDEN_SIZE
    ks = jax.random.split(key, 6)

    def linear(kw, kb, fan_in, fan_out):
        # Kaiming-uniform-ish like torch.nn.Linear default init, deterministic.
        bound = 1.0 / jnp.sqrt(fan_in)
        w = jax.random.uniform(kw, (fan_in, fan_out), jnp.float32, -bound, bound)
        b = jax.random.uniform(kb, (1, fan_out), jnp.float32, -bound, bound)
        return w, b

    w1, b1 = linear(ks[0], ks[1], din, h)
    w2, b2 = linear(ks[2], ks[3], h, h)
    w3, b3 = linear(ks[4], ks[5], h, h)
    return (w1, b1, w2, b2, w3, b3)


# ------------------------------ reference (JAX) -------------------------------
def reference(obs, params):
    w1, b1, w2, b2, w3, b3 = params
    x = obs[:, SELF_OBS_DIM:SELF_OBS_DIM + ALL_NEIGHBOR_OBS_SIZE]
    h = jnp.tanh(x @ w1 + b1)
    h = jnp.tanh(h @ w2 + b2)
    h = jnp.tanh(h @ w3 + b3)
    return h


if __name__ == "__main__":
    key = jax.random.PRNGKey(0)
    k_obs, k_params = jax.random.split(key)

    obs = jax.random.normal(k_obs, (BATCH, OBS_DIM), jnp.float32)
    params = init_params(k_params)

    # tile_b=128 keeps the example small while exercising a multi-step grid
    # (BATCH=200 -> padded to 256, 2 grid steps).
    out = quad_neighborhood_encoder_mlp(obs, params, tile_b=128)
    out = jax.block_until_ready(out)

    ref = reference(obs, params)
    assert out.shape == (BATCH, NEIGHBOR_HIDDEN_SIZE)
    # bf16 MXU operands with f32 accumulate -> loosened tolerance vs f32 ref.
    assert jnp.allclose(out, ref, atol=2e-2, rtol=2e-2), (
        float(jnp.max(jnp.abs(out - ref))))

    print("KERNEL_OK")
</pallas_src>

<mosaic_0001>
module attributes {stable_mosaic.version = 11 : i64} {
  func.func @neighborhood_mlp_kernel(%arg0: i32, %arg1: memref<128x58xbf16, #tpu.memory_space<vmem>>, %arg2: memref<58x128xbf16, #tpu.memory_space<vmem>>, %arg3: memref<1x128xf32, #tpu.memory_space<vmem>>, %arg4: memref<128x128xbf16, #tpu.memory_space<vmem>>, %arg5: memref<1x128xf32, #tpu.memory_space<vmem>>, %arg6: memref<128x128xbf16, #tpu.memory_space<vmem>>, %arg7: memref<1x128xf32, #tpu.memory_space<vmem>>, %arg8: memref<128x128xf32, #tpu.memory_space<vmem>>) attributes {dimension_semantics = [#tpu.dimension_semantics<parallel>], iteration_bounds = array<i64: 2>, scalar_prefetch = 0 : i64, scratch_operands = 0 : i64, tpu.core_type = #tpu.core_type<tc>, window_params = [{transform_indices = @transform_0, window_bounds = array<i64: 128, 58>}, {pipeline_mode = #tpu.pipeline_mode<synchronous>, transform_indices = @transform_1, window_bounds = array<i64: 58, 128>}, {pipeline_mode = #tpu.pipeline_mode<synchronous>, transform_indices = @transform_2, window_bounds = array<i64: 1, 128>}, {pipeline_mode = #tpu.pipeline_mode<synchronous>, transform_indices = @transform_3, window_bounds = array<i64: 128, 128>}, {pipeline_mode = #tpu.pipeline_mode<synchronous>, transform_indices = @transform_4, window_bounds = array<i64: 1, 128>}, {pipeline_mode = #tpu.pipeline_mode<synchronous>, transform_indices = @transform_5, window_bounds = array<i64: 128, 128>}, {pipeline_mode = #tpu.pipeline_mode<synchronous>, transform_indices = @transform_6, window_bounds = array<i64: 1, 128>}, {transform_indices = @transform_7, window_bounds = array<i64: 128, 128>}]} {
    %c0 = arith.constant 0 : index
    %c0_0 = arith.constant 0 : index
    %0 = vector.load %arg1[%c0, %c0_0] : memref<128x58xbf16, #tpu.memory_space<vmem>>, vector<128x58xbf16>
    %c0_1 = arith.constant 0 : index
    %c0_2 = arith.constant 0 : index
    %1 = vector.load %arg2[%c0_1, %c0_2] : memref<58x128xbf16, #tpu.memory_space<vmem>>, vector<58x128xbf16>
    %cst = arith.constant dense<0.000000e+00> : vector<128x128xf32>
    %2 = tpu.matmul %0, %1, %cst {dimension_numbers = #tpu.dot_dimension_numbers<[1], [0], [0], [1], [0, 0, 1, 1], [], []>} : vector<128x58xbf16>, vector<58x128xbf16>, vector<128x128xf32> -> vector<128x128xf32>
    %c0_3 = arith.constant 0 : index
    %c0_4 = arith.constant 0 : index
    %3 = vector.load %arg3[%c0_3, %c0_4] : memref<1x128xf32, #tpu.memory_space<vmem>>, vector<1x128xf32>
    %4 = vector.broadcast %3 : vector<1x128xf32> to vector<128x128xf32>
    %5 = arith.addf %2, %4 : vector<128x128xf32>
    %6 = math.tanh %5 : vector<128x128xf32>
    %7 = arith.truncf %6 : vector<128x128xf32> to vector<128x128xbf16>
    %c0_5 = arith.constant 0 : index
    %c0_6 = arith.constant 0 : index
    %8 = vector.load %arg4[%c0_5, %c0_6] : memref<128x128xbf16, #tpu.memory_space<vmem>>, vector<128x128xbf16>
    %cst_7 = arith.constant dense<0.000000e+00> : vector<128x128xf32>
    %9 = tpu.matmul %7, %8, %cst_7 {dimension_numbers = #tpu.dot_dimension_numbers<[1], [0], [0], [1], [0, 0, 1, 1], [], []>} : vector<128x128xbf16>, vector<128x128xbf16>, vector<128x128xf32> -> vector<128x128xf32>
    %c0_8 = arith.constant 0 : index
    %c0_9 = arith.constant 0 : index
    %10 = vector.load %arg5[%c0_8, %c0_9] : memref<1x128xf32, #tpu.memory_space<vmem>>, vector<1x128xf32>
    %11 = vector.broadcast %10 : vector<1x128xf32> to vector<128x128xf32>
    %12 = arith.addf %9, %11 : vector<128x128xf32>
    %13 = math.tanh %12 : vector<128x128xf32>
    %14 = arith.truncf %13 : vector<128x128xf32> to vector<128x128xbf16>
    %c0_10 = arith.constant 0 : index
    %c0_11 = arith.constant 0 : index
    %15 = vector.load %arg6[%c0_10, %c0_11] : memref<128x128xbf16, #tpu.memory_space<vmem>>, vector<128x128xbf16>
    %cst_12 = arith.constant dense<0.000000e+00> : vector<128x128xf32>
    %16 = tpu.matmul %14, %15, %cst_12 {dimension_numbers = #tpu.dot_dimension_numbers<[1], [0], [0], [1], [0, 0, 1, 1], [], []>} : vector<128x128xbf16>, vector<128x128xbf16>, vector<128x128xf32> -> vector<128x128xf32>
    %c0_13 = arith.constant 0 : index
    %c0_14 = arith.constant 0 : index
    %17 = vector.load %arg7[%c0_13, %c0_14] : memref<1x128xf32, #tpu.memory_space<vmem>>, vector<1x128xf32>
    %18 = vector.broadcast %17 : vector<1x128xf32> to vector<128x128xf32>
    %19 = arith.addf %16, %18 : vector<128x128xf32>
    %20 = math.tanh %19 : vector<128x128xf32>
    %c0_15 = arith.constant 0 : index
    %c0_16 = arith.constant 0 : index
    %21 = vector.load %arg8[%c0_15, %c0_16] : memref<128x128xf32, #tpu.memory_space<vmem>>, vector<128x128xf32>
    tpu.vector_store %arg8[%c0_15, %c0_16], %20 {strides = array<i32>} : memref<128x128xf32, #tpu.memory_space<vmem>>, vector<128x128xf32>,
    return
  }
  func.func @transform_0(%arg0: i32) -> (i32, i32) {
    %c0_i32 = arith.constant 0 : i32
    %c0_i32_0 = arith.constant 0 : i32
    return %arg0, %c0_i32 : i32, i32
  }
  func.func @transform_1(%arg0: i32) -> (i32, i32) {
    %c0_i32 = arith.constant 0 : i32
    %c0_i32_0 = arith.constant 0 : i32
    %c0_i32_1 = arith.constant 0 : i32
    return %c0_i32, %c0_i32_0 : i32, i32
  }
  func.func @transform_2(%arg0: i32) -> (i32, i32) {
    %c0_i32 = arith.constant 0 : i32
    %c0_i32_0 = arith.constant 0 : i32
    %c0_i32_1 = arith.constant 0 : i32
    return %c0_i32, %c0_i32_0 : i32, i32
  }
  func.func @transform_3(%arg0: i32) -> (i32, i32) {
    %c0_i32 = arith.constant 0 : i32
    %c0_i32_0 = arith.constant 0 : i32
    %c0_i32_1 = arith.constant 0 : i32
    return %c0_i32, %c0_i32_0 : i32, i32
  }
  func.func @transform_4(%arg0: i32) -> (i32, i32) {
    %c0_i32 = arith.constant 0 : i32
    %c0_i32_0 = arith.constant 0 : i32
    %c0_i32_1 = arith.constant 0 : i32
    return %c0_i32, %c0_i32_0 : i32, i32
  }
  func.func @transform_5(%arg0: i32) -> (i32, i32) {
    %c0_i32 = arith.constant 0 : i32
    %c0_i32_0 = arith.constant 0 : i32
    %c0_i32_1 = arith.constant 0 : i32
    return %c0_i32, %c0_i32_0 : i32, i32
  }
  func.func @transform_6(%arg0: i32) -> (i32, i32) {
    %c0_i32 = arith.constant 0 : i32
    %c0_i32_0 = arith.constant 0 : i32
    %c0_i32_1 = arith.constant 0 : i32
    return %c0_i32, %c0_i32_0 : i32, i32
  }
  func.func @transform_7(%arg0: i32) -> (i32, i32) {
    %c0_i32 = arith.constant 0 : i32
    %c0_i32_0 = arith.constant 0 : i32
    return %arg0, %c0_i32 : i32, i32
  }
}

</mosaic_0001>

<bundles_post_ra>
// kernel: tpu_custom_call.1
= control target key start
LH: loop header
LB: loop body
LE: loop exit
PB: predicated region body
PF: predicated region fallthrough
CT: control target
= control target key end

     0   :  { %12 = vsyncpa [#allocation3], 0  ;;  %s1716_s0 = inlined_call_operand.vmem [shape: bf16[256,58], index: 0, kind: input, shape index: {}]   ;;  %s1717_s1 = inlined_call_operand.vmem [shape: bf16[58,128], index: 1, kind: input, shape index: {}]   ;;  %s1718_s2 = inlined_call_operand.vmem [shape: f32[1,128], index: 2, kind: input, shape index: {}]   ;;  %s1719_s3 = inlined_call_operand.vmem [shape: bf16[128,128], index: 3, kind: input, shape index: {}]   ;;  %s1720_s4 = inlined_call_operand.vmem [shape: f32[1,128], index: 4, kind: input, shape index: {}]   ;;  %s1721_s5 = inlined_call_operand.vmem [shape: bf16[128,128], index: 5, kind: input, shape index: {}]   ;;  %s1722_s6 = inlined_call_operand.vmem [shape: f32[1,128], index: 6, kind: input, shape index: {}]   ;;  %s1723_s7 = inlined_call_operand.hbm [shape: f32[256,128], index: 7, kind: output, shape index: {}]  }
   0x1   :  { %14 = vsyncpa [#allocation3 + $0x1], 0  ;;  %s1466_s24 = smov 0   ;;  %s1468_s25 = smov 0  }
   0x2   :  { %s1470_s26 = smov 0   ;;  %s1472_s27 = smov 0  }
   0x3 LB: > { %s1487_s28 = sadd.s32 4294967295, %s1421_s27   ;;  %s993_s29 = sadd.s32 4294967294, %s1421_s27   ;;  %s1421_s27 = sphi %s1472_s27, %s1729_s27   ;;  %s1417_s26 = sphi %s1470_s26, %s1728_s26   ;;  %s1413_s25 = sphi %s1468_s25, %s1727_s25   ;;  %s1409_s24 = sphi %s1466_s24, %s1726_s24  }
   0x4   : > { %s1491_s30 = sadd.s32 1, %s1421_s27   ;;  %s179_s8 = sadd.s32 1, %s1417_s26 }
   0x5   : > { %s176_s9 = ssub.s32 %s1421_s27, %s1491_s30  ;;  %p189_p0 = scmp.ne.s32.totalorder %s1417_s26, %s1413_s25 }
   0x6   : > { %p177_p1 = scmp.eq.s32.totalorder %s176_s9, 0  ;;  %p190_p2 = scmp.eq.s32.totalorder %s1487_s28, 1 }
   0x7   : > { %p195_p3 = scmp.ne.s32.totalorder %s1413_s25, %s1409_s24  ;;  %p196_p4 = scmp.eq.s32.totalorder %s993_s29, 1 }
   0x8   : > { %s1502_s10 = scalar_select %p177_p1, %s1417_s26, %s179_s8  }
   0x9   : > { %p1504_p5 = por %p190_p2, %p189_p0  ;;  %p1508_p6 = por %p196_p4, %p195_p3 }
   0xa   : > { %p996_p7 = scmp.ge.s32.totalorder %s1421_s27, 1  ;;  %p241_p8 = scmp.lt.s32.totalorder %s1421_s27, 3 }
   0xc   : > { %p242_p9 = pnand %p996_p7, %p241_p8 }
   0xd   : > { %v1235_v0 = vld [vmem:[%s1717_s1] sm:$0xff] (!%p242_p9)   ;;  %v1236_v1 = vld [vmem:[%s1717_s1 + $0x8] sm:$0xff] (!%p242_p9)   ;;  %s998_s17 = sshll.u32 (!%p242_p9), %s1487_s28, 4  ;;  %v1237_v2 = vld [vmem:[%s1717_s1 + $0x10] sm:$0xff] (!%p242_p9)   ;;  %vm375_vm0 = vcmask (!%p242_p9), 474112   ;;  %vm400_vm1 = vcmask (!%p242_p9), 1044480  }
   0xe   : > { %245 = sbr.rel (%p242_p9) target bundleno = 759 (0x2f7), region = 48  ;;  %1089 = vmatprep.subr.bf16.mxu0 (!%p242_p9), %v1235_v0  ;;  %p274_p10 = scmp.lt.s32.totalorder (!%p242_p9), %s998_s17, 31  ;;  %v1247_v3 = vld [vmem:[%s1719_s3] sm:$0xff] (!%p242_p9)   ;;  %v1238_v4 = vld [vmem:[%s1717_s1 + $0x18] sm:$0x1f] (!%p242_p9)   ;;  %v1248_v5 = vld [vmem:[%s1719_s3 + $0x8] sm:$0xff] (!%p242_p9)  }
   0xf   : > { %1090 = vmatpush3.bf16.msra.mxu0 (!%p242_p9), %v1235_v0  ;;  %1113 = vmatprep.subr.bf16.mxu1 (!%p242_p9), %v1247_v3  ;;  %v1249_v7 = vld [vmem:[%s1719_s3 + $0x10] sm:$0xff] (!%p242_p9)   ;;  %v402_v8 = vsel (!%p242_p9), %vm400_vm1, %v1238_v4, 0  ;;  %v1250_v16 = vld [vmem:[%s1719_s3 + $0x18] sm:$0xff] (!%p242_p9)   ;;  %v1251_v17 = vld [vmem:[%s1719_s3 + $0x20] sm:$0xff] (!%p242_p9)   ;;  %s270_s22 = sand.u32 (!%p242_p9), 1, %s1413_s25   ;;  %s1044_s8 = sshll.u32 (!%p242_p9), %s1487_s28, 11 }
  0x10   : > { %1091 = vmatprep.subr.bf16.mxu0 (!%p242_p9), %v1236_v1  ;;  %1114 = vmatpush3.bf16.msra.mxu1 (!%p242_p9), %v1247_v3  ;;  %v1252_v18 = vld [vmem:[%s1719_s3 + $0x28] sm:$0xff] (!%p242_p9)   ;;  %v1253_v19 = vld [vmem:[%s1719_s3 + $0x30] sm:$0xff] (!%p242_p9)   ;;  %v1254_v20 = vld [vmem:[%s1719_s3 + $0x38] sm:$0xff] (!%p242_p9)   ;;  %s997_s23 = sshll.u32 (!%p242_p9), %s270_s22, 7  ;;  %s1675_s28 = scalar_lea.sflag (!%p242_p9), [#allocation3], %s270_s22 }
  0x11   : > { %1115 = vmatprep.subr.bf16.mxu1 (!%p242_p9), %v1248_v5  ;;  %v1255_v21 = vld [vmem:[%s1721_s5] sm:$0xff] (!%p242_p9)   ;;  %v1568_v22 = vld [vmem:[%s1721_s5 + $0x8] sm:$0xff] (!%p242_p9)   ;;  %v1574_v23 = vld [vmem:[%s1721_s5 + $0x10] sm:$0xff] (!%p242_p9)   ;;  %s1423_s18 = smov (!%p242_p9), [#allocation2]  }
  0x12   : > { %v1582_v24 = vld [vmem:[%s1718_s2] ss:$0 sm:$0xff] (!%p242_p9) }
  0x13   : > { %1092 = vmatpush3.bf16.msra.mxu0 (!%p242_p9), %v1236_v1 }
  0x14   : > { %1093 = vmatprep.subr.bf16.mxu0 (!%p242_p9), %v1237_v2  ;;  %1116 = vmatpush3.bf16.msra.mxu1 (!%p242_p9), %v1248_v5 }
  0x15   : > { %s1731_s17 = smov (!%p274_p10, %s998_s17), 31  ;;  %1117 = vmatprep.subr.bf16.mxu1 %v1249_v7 }
  0x16   : > { %s999_s29 = sshll.u32 %s1731_s17, 2  ;;  %s1363_s17 = sshll.u32 %s1423_s18, 4  ;;  %s1364_s17 = int_to_ptr.vmem [resolvable:$false] %s1363_s17 }
  0x17   : > { %s277_s15 = scalar_lea.vmem %s1716_s0, %s999_s29  ;;  %1094 = vmatpush3.bf16.msra.mxu0 %v1237_v2  ;;  %s1638_s29 = scalar_lea.vmem [#allocation2], %s997_s23 }
  0x18   : > { %v1239_v6 = vld [vmem:[%s277_s15] sm:$0xff]   ;;  %1193 = vmatprep.subr.msk.bf16.mxu0 %vm400_vm1, %v1238_v4  ;;  %v1240_v9 = vld [vmem:[%s277_s15 + $0x8] sm:$0xff]   ;;  %v1241_v10 = vld [vmem:[%s277_s15 + $0x10] sm:$0xff]   ;;  %1118 = vmatpush3.bf16.msra.mxu1 %v1249_v7  ;;  %s931_s9 = sshll.u32 %s1638_s29, 4  ;;  %s1365_s19 = scalar_lea.vmem %s1364_s17, 4096  ;;  %s1668_s9 = int_to_ptr.vmem [resolvable:$true] %s931_s9 }
  0x19   : > { %1097 = vmatprep.mubr.msk.bf16.mxu0 %vm375_vm0, %v1239_v6  ;;  %v1242_v11 = vld [vmem:[%s277_s15 + $0x18] sm:$0xff]   ;;  %v1243_v12 = vld [vmem:[%s277_s15 + $0x20] sm:$0xff]   ;;  %v1244_v13 = vld [vmem:[%s277_s15 + $0x28] sm:$0xff]   ;;  %1119 = vmatprep.subr.bf16.mxu1 %v1250_v16  ;;  %s1359_s16 = scalar_lea.vmem %s1668_s9, 2048  ;;  %p1366_p0 = scmp.lt.s32.totalorder %s1668_s9, %s1364_s17 }
  0x1a   : > { %v1245_v14 = vld [vmem:[%s277_s15 + $0x30] sm:$0xff]   ;;  %v1246_v15 = vld [vmem:[%s277_s15 + $0x38] sm:$0xff]   ;;  %s1666_s15 = scalar_lea.hbm %s1723_s7, %s1044_s8  ;;  %p1360_p11 = scmp.ne.s32.totalorder %s1668_s9, %s1359_s16 }
  0x1b   : > { %1096 = vmatpush3.bf16.msra.mxu0 %v402_v8  ;;  %p1367_p1 = scmp.lt.s32.totalorder %s1365_s19, %s1359_s16 }
  0x1c   : > { %1120 = vmatpush3.bf16.msra.mxu1 %v1250_v16  ;;  %1145 = vmatprep.subr.bf16.mxu0 %v1255_v21  ;;  %p1361_p12 = pnand %p1360_p11, %p1504_p5 }
  0x1d   : > { %1121 = vmatprep.subr.bf16.mxu1 %v1251_v17  ;;  %p1368_p2 = por %p1367_p1, %p1366_p0 }
  0x1e   : > { %1098 = vmatmul.mubr.msk.bf16.vlgmr.msra.gmra.mrb[0].mxu0 %vm375_vm0, %v1240_v9  ;;  %p1362_p13 = pneg %p1361_p12 }
  0x1f   : > { %1101 = vmatprep.mubr.msk.bf16.mxu0 %vm375_vm0, %v1241_v10  ;;  %1146 = vmatpush3.bf16.msra.mxu0 %v1255_v21 }
  0x20   : > { %1122 = vmatpush3.bf16.msra.mxu1 %v1251_v17  ;;  %1147 = vmatprep.subr.bf16.mxu0 %v1568_v22  ;;  %v1258_v17 = vld [vmem:[%s1721_s5 + $0x18] sm:$0xff]   ;;  %p1369_p3 = pnand %p1368_p2, %p1362_p13 }
  0x21   : > { %1123 = vmatprep.subr.bf16.mxu1 %v1252_v18 }
  0x23   : > { %1148 = vmatpush3.bf16.msra.mxu0 %v1568_v22 }
  0x24   : > { %1124 = vmatpush3.bf16.msra.mxu1 %v1252_v18  ;;  %1149 = vmatprep.subr.bf16.mxu0 %v1574_v23  ;;  %v1259_v18 = vld [vmem:[%s1721_s5 + $0x20] sm:$0xff]  }
  0x25   : > { %1125 = vmatprep.subr.bf16.mxu1 %v1253_v19 }
  0x26   : > { %1102 = vmatmul.mubr.msk.bf16.gmra.mrb[4].mxu0 %vm375_vm0, %v1242_v11 }
  0x27   : > { %1105 = vmatprep.mubr.msk.bf16.mxu0 %vm375_vm0, %v1243_v12  ;;  %1150 = vmatpush3.bf16.msra.mxu0 %v1574_v23 }
  0x28   : > { %1126 = vmatpush3.bf16.msra.mxu1 %v1253_v19  ;;  %1151 = vmatprep.subr.bf16.mxu0 %v1258_v17  ;;  %v1260_v19 = vld [vmem:[%s1721_s5 + $0x28] sm:$0xff]  }
  0x29   : > { %1127 = vmatprep.subr.bf16.mxu1 %v1254_v20 }
  0x2b   : > { %1152 = vmatpush3.bf16.msra.mxu0 %v1258_v17 }
  0x2c   : > { %1128 = vmatpush3.bf16.msra.mxu1 %v1254_v20  ;;  %1153 = vmatprep.subr.bf16.mxu0 %v1259_v18  ;;  %v1261_v20 = vld [vmem:[%s1721_s5 + $0x30] sm:$0xff]  }
  0x2d   : > { %1177 = vmatprep.subr.bf16.mxu1 %v1255_v21 }
  0x2e   : > { %1106 = vmatmul.mubr.msk.bf16.gmra.mrb[8].mxu0 %vm375_vm0, %v1244_v13 }
  0x2f   : > { %1109 = vmatprep.mubr.msk.bf16.mxu0 %vm375_vm0, %v1245_v14  ;;  %1154 = vmatpush3.bf16.msra.mxu0 %v1259_v18 }
  0x30   : > { %1155 = vmatprep.subr.bf16.mxu0 %v1260_v19 }
  0x33   : > { %1156 = vmatpush3.bf16.msra.mxu0 %v1260_v19 }
  0x34   : > { %1157 = vmatprep.subr.bf16.mxu0 %v1261_v20 }
  0x36   : > { %1110 = vmatmul.mubr.msk.bf16.gmra.mrb[12].mxu0 %vm375_vm0, %v1246_v15 }
  0x37   : > { %1158 = vmatpush3.bf16.msra.mxu0 %v1261_v20 }
  0xf1   : > { %v1099_v25 = vpop.f32.mrb[0].mxu0 }
  0xf2   : > { %v447_v26 = vadd.f32 %v1099_v25, %v1582_v24  ;;  %v438_v27 = vpop.f32.mrb[1].mxu0 }
  0xf3   : > { %v439_v28 = vadd.f32 %v1582_v24, %v438_v27  ;;  %v1100_v29 = vpop.f32.mrb[2].mxu0 }
  0xf4   : > { %1263 = vtanh.f32 %v447_v26  ;;  %v450_v30 = vadd.f32 %v1100_v29, %v1582_v24  ;;  %v441_v31 = vpop.f32.mrb[3].mxu0 }
  0xf5   : > { %1265 = vtanh.f32 %v439_v28  ;;  %v442_v32 = vadd.f32 %v1582_v24, %v441_v31 }
  0xf6   : > { %1267 = vtanh.f32 %v450_v30 }
  0xf7   : > { %1269 = vtanh.f32 %v442_v32 }
  0xf9   : > { %v1103_v33 = vpop.f32.mrb[4].mxu0 }
  0xfa   : > { %v463_v34 = vadd.f32 %v1103_v33, %v1582_v24  ;;  %v454_v35 = vpop.f32.mrb[5].mxu0 }
  0xfb   : > { %v455_v36 = vadd.f32 %v1582_v24, %v454_v35  ;;  %v1104_v37 = vpop.f32.mrb[6].mxu0 }
  0xfc   : > { %1271 = vtanh.f32 %v463_v34  ;;  %v466_v38 = vadd.f32 %v1104_v37, %v1582_v24  ;;  %v457_v39 = vpop.f32.mrb[7].mxu0 }
  0xfd   : > { %1273 = vtanh.f32 %v455_v36  ;;  %v458_v40 = vadd.f32 %v1582_v24, %v457_v39 }
  0xfe   : > { %v1264_v41 = vpop.eup %1263  ;;  %1275 = vtanh.f32 %v466_v38 }
  0xff   : > { %v1266_v42 = vpop.eup %1265  ;;  %1277 = vtanh.f32 %v458_v40 }
 0x100   : > { %v1268_v43 = vpop.eup %1267 }
 0x101   : > { %v1270_v44 = vpop.eup %1269  ;;  %v1107_v45 = vpop.f32.mrb[8].mxu0  ;;  %v518_v46 = vpack.c.bf16 %v1268_v43, %v1264_v41 }
 0x102   : > { %v479_v47 = vadd.f32 %v1107_v45, %v1582_v24  ;;  %v470_v48 = vpop.f32.mrb[9].mxu0  ;;  %v517_v49 = vpack.c.bf16 %v1270_v44, %v1266_v42 }
 0x103   : > { %v471_v50 = vadd.f32 %v1582_v24, %v470_v48  ;;  %v1108_v51 = vpop.f32.mrb[10].mxu0 }
 0x104   : > { %1279 = vtanh.f32 %v479_v47  ;;  %v482_v52 = vadd.f32 %v1108_v51, %v1582_v24  ;;  %v473_v53 = vpop.f32.mrb[11].mxu0  ;;  %1129 = vmatprep.mubr.bf16.mxu1 %v517_v49 }
 0x105   : > { %1281 = vtanh.f32 %v471_v50  ;;  %v474_v54 = vadd.f32 %v1582_v24, %v473_v53  ;;  %1130 = vmatmul.mubr.bf16.vlgmr.msra.gmra.mrb[0].mxu1 %v518_v46 }
 0x106   : > { %v1272_v55 = vpop.eup %1271  ;;  %1283 = vtanh.f32 %v482_v52  ;;  %1185 = vmatpush3.bf16.msra.mxu1 %v1255_v21  ;;  %v1262_v21 = vld [vmem:[%s1721_s5 + $0x38] sm:$0xff]  }
 0x107   : > { %v1274_v56 = vpop.eup %1273  ;;  %1285 = vtanh.f32 %v474_v54  ;;  %1178 = vmatprep.subr.bf16.mxu1 %v1568_v22  ;;  %1159 = vmatprep.subr.bf16.mxu0 %v1262_v21 }
 0x108   : > { %v1276_v57 = vpop.eup %1275  ;;  %1160 = vmatpush3.bf16.msra.mxu0 %v1262_v21 }
 0x109   : > { %v1278_v58 = vpop.eup %1277  ;;  %v1111_v59 = vpop.f32.mrb[12].mxu0  ;;  %v520_v60 = vpack.c.bf16 %v1276_v57, %v1272_v55 }
 0x10a   : > { %v495_v61 = vadd.f32 %v1111_v59, %v1582_v24  ;;  %v486_v62 = vpop.f32.mrb[13].mxu0  ;;  %v519_v63 = vpack.c.bf16 %v1278_v58, %v1274_v56  ;;  %1186 = vmatpush3.bf16.msra.mxu1 %v1568_v22  ;;  %v1021_v22 = vld [vmem:[%s1720_s4] ss:$0 sm:$0xff] }
 0x10b   : > { %v487_v0 = vadd.f32 %v1582_v24, %v486_v62  ;;  %v1112_v1 = vpop.f32.mrb[14].mxu0  ;;  %1179 = vmatprep.subr.bf16.mxu1 %v1574_v23 }
 0x10c   : > { %1287 = vtanh.f32 %v495_v61  ;;  %v498_v2 = vadd.f32 %v1112_v1, %v1582_v24  ;;  %v489_v3 = vpop.f32.mrb[15].mxu0  ;;  %1133 = vmatprep.mubr.bf16.mxu1 %v519_v63 }
 0x10d   : > { %1289 = vtanh.f32 %v487_v0  ;;  %v490_v4 = vadd.f32 %v1582_v24, %v489_v3  ;;  %1134 = vmatmul.mubr.bf16.gmra.mrb[4].mxu1 %v520_v60 }
 0x10e   : > { %v1280_v5 = vpop.eup %1279  ;;  %1291 = vtanh.f32 %v498_v2  ;;  %1187 = vmatpush3.bf16.msra.mxu1 %v1574_v23 }
 0x10f   : > { %v1282_v6 = vpop.eup %1281  ;;  %1293 = vtanh.f32 %v490_v4  ;;  %1180 = vmatprep.subr.bf16.mxu1 %v1258_v17 }
 0x110   : > { %v1284_v7 = vpop.eup %1283 }
 0x111   : > { %v1286_v8 = vpop.eup %1285  ;;  %v522_v9 = vpack.c.bf16 %v1284_v7, %v1280_v5 }
 0x112   : > { %v521_v10 = vpack.c.bf16 %v1286_v8, %v1282_v6  ;;  %1188 = vmatpush3.bf16.msra.mxu1 %v1258_v17 }
 0x113   : > { %1181 = vmatprep.subr.bf16.mxu1 %v1259_v18 }
 0x114   : > { %1137 = vmatprep.mubr.bf16.mxu1 %v521_v10 }
 0x115   : > { %1138 = vmatmul.mubr.bf16.gmra.mrb[8].mxu1 %v522_v9 }
 0x116   : > { %v1288_v11 = vpop.eup %1287  ;;  %1189 = vmatpush3.bf16.msra.mxu1 %v1259_v18 }
 0x117   : > { %v1290_v12 = vpop.eup %1289  ;;  %1182 = vmatprep.subr.bf16.mxu1 %v1260_v19 }
 0x118   : > { %v1292_v13 = vpop.eup %1291 }
 0x119   : > { %v1294_v14 = vpop.eup %1293  ;;  %v524_v15 = vpack.c.bf16 %v1292_v13, %v1288_v11 }
 0x11a   : > { %v523_v16 = vpack.c.bf16 %v1294_v14, %v1290_v12  ;;  %1190 = vmatpush3.bf16.msra.mxu1 %v1260_v19 }
 0x11b   : > { %1183 = vmatprep.subr.bf16.mxu1 %v1261_v20 }
 0x11c   : > { %1141 = vmatprep.mubr.bf16.mxu1 %v523_v16 }
 0x11d   : > { %1142 = vmatmul.mubr.bf16.gmra.mrb[12].mxu1 %v524_v15  ;;  %v1625_v15 = vld [vmem:[%s1722_s6] ss:$0 sm:$0xff] }
 0x11e   : > { %1191 = vmatpush3.bf16.msra.mxu1 %v1261_v20 }
 0x11f   : > { %1184 = vmatprep.subr.bf16.mxu1 %v1262_v21 }
 0x122   : > { %1192 = vmatpush3.bf16.msra.mxu1 %v1262_v21 }
 0x1d8   : > { %v1131_v23 = vpop.f32.mrb[0].mxu1 }
 0x1d9   : > { %v639_v24 = vadd.f32 %v1131_v23, %v1021_v22  ;;  %v630_v25 = vpop.f32.mrb[1].mxu1 }
 0x1da   : > { %v631_v26 = vadd.f32 %v1021_v22, %v630_v25  ;;  %v1132_v27 = vpop.f32.mrb[2].mxu1 }
 0x1db   : > { %1295 = vtanh.f32 %v639_v24  ;;  %v642_v28 = vadd.f32 %v1132_v27, %v1021_v22  ;;  %v633_v29 = vpop.f32.mrb[3].mxu1 }
 0x1dc   : > { %1297 = vtanh.f32 %v631_v26  ;;  %v634_v30 = vadd.f32 %v1021_v22, %v633_v29 }
 0x1dd   : > { %1299 = vtanh.f32 %v642_v28 }
 0x1de   : > { %1301 = vtanh.f32 %v634_v30 }
 0x1e0   : > { %v1135_v31 = vpop.f32.mrb[4].mxu1 }
 0x1e1   : > { %v655_v32 = vadd.f32 %v1135_v31, %v1021_v22  ;;  %v646_v33 = vpop.f32.mrb[5].mxu1 }
 0x1e2   : > { %v647_v34 = vadd.f32 %v1021_v22, %v646_v33  ;;  %v1136_v35 = vpop.f32.mrb[6].mxu1 }
 0x1e3   : > { %1303 = vtanh.f32 %v655_v32  ;;  %v658_v36 = vadd.f32 %v1136_v35, %v1021_v22  ;;  %v649_v37 = vpop.f32.mrb[7].mxu1 }
 0x1e4   : > { %1305 = vtanh.f32 %v647_v34  ;;  %v650_v38 = vadd.f32 %v1021_v22, %v649_v37 }
 0x1e5   : > { %v1296_v39 = vpop.eup %1295  ;;  %1307 = vtanh.f32 %v658_v36 }
 0x1e6   : > { %v1298_v40 = vpop.eup %1297  ;;  %1309 = vtanh.f32 %v650_v38 }
 0x1e7   : > { %v1300_v41 = vpop.eup %1299 }
 0x1e8   : > { %v1302_v42 = vpop.eup %1301  ;;  %v1139_v43 = vpop.f32.mrb[8].mxu1  ;;  %v710_v44 = vpack.c.bf16 %v1300_v41, %v1296_v39 }
 0x1e9   : > { %v671_v45 = vadd.f32 %v1139_v43, %v1021_v22  ;;  %v662_v46 = vpop.f32.mrb[9].mxu1  ;;  %v709_v47 = vpack.c.bf16 %v1302_v42, %v1298_v40 }
 0x1ea   : > { %v663_v48 = vadd.f32 %v1021_v22, %v662_v46  ;;  %v1140_v49 = vpop.f32.mrb[10].mxu1 }
 0x1eb   : > { %1311 = vtanh.f32 %v671_v45  ;;  %v674_v50 = vadd.f32 %v1140_v49, %v1021_v22  ;;  %v665_v51 = vpop.f32.mrb[11].mxu1  ;;  %1161 = vmatprep.mubr.bf16.mxu0 %v709_v47 }
 0x1ec   : > { %1313 = vtanh.f32 %v663_v48  ;;  %v666_v52 = vadd.f32 %v1021_v22, %v665_v51  ;;  %1162 = vmatmul.mubr.bf16.vlgmr.msra.gmra.mrb[16].mxu0 %v710_v44 }
 0x1ed   : > { %v1304_v53 = vpop.eup %1303  ;;  %1315 = vtanh.f32 %v674_v50 }
 0x1ee   : > { %v1306_v54 = vpop.eup %1305  ;;  %1317 = vtanh.f32 %v666_v52 }
 0x1ef   : > { %v1308_v55 = vpop.eup %1307 }
 0x1f0   : > { %v1310_v56 = vpop.eup %1309  ;;  %v1143_v57 = vpop.f32.mrb[12].mxu1  ;;  %v712_v58 = vpack.c.bf16 %v1308_v55, %v1304_v53 }
 0x1f1   : > { %v687_v59 = vadd.f32 %v1143_v57, %v1021_v22  ;;  %v678_v60 = vpop.f32.mrb[13].mxu1  ;;  %v711_v61 = vpack.c.bf16 %v1310_v56, %v1306_v54 }
 0x1f2   : > { %v679_v62 = vadd.f32 %v1021_v22, %v678_v60  ;;  %v1144_v63 = vpop.f32.mrb[14].mxu1 }
 0x1f3   : > { %1319 = vtanh.f32 %v687_v59  ;;  %v690_v0 = vadd.f32 %v1144_v63, %v1021_v22  ;;  %v681_v1 = vpop.f32.mrb[15].mxu1  ;;  %1165 = vmatprep.mubr.bf16.mxu0 %v711_v61 }
 0x1f4   : > { %1321 = vtanh.f32 %v679_v62  ;;  %v682_v2 = vadd.f32 %v1021_v22, %v681_v1  ;;  %1166 = vmatmul.mubr.bf16.gmra.mrb[20].mxu0 %v712_v58 }
 0x1f5   : > { %v1312_v3 = vpop.eup %1311  ;;  %1323 = vtanh.f32 %v690_v0 }
 0x1f6   : > { %v1314_v4 = vpop.eup %1313  ;;  %1325 = vtanh.f32 %v682_v2 }
 0x1f7   : > { %v1316_v5 = vpop.eup %1315 }
 0x1f8   : > { %v1318_v6 = vpop.eup %1317  ;;  %v714_v7 = vpack.c.bf16 %v1316_v5, %v1312_v3 }
 0x1f9   : > { %v713_v8 = vpack.c.bf16 %v1318_v6, %v1314_v4 }
 0x1fb   : > { %1169 = vmatprep.mubr.bf16.mxu0 %v713_v8 }
 0x1fc   : > { %1170 = vmatmul.mubr.bf16.gmra.mrb[24].mxu0 %v714_v7 }
 0x1fd   : > { %v1320_v9 = vpop.eup %1319 }
 0x1fe   : > { %v1322_v10 = vpop.eup %1321 }
 0x1ff   : > { %v1324_v11 = vpop.eup %1323 }
 0x200   : > { %v1326_v12 = vpop.eup %1325  ;;  %v716_v13 = vpack.c.bf16 %v1324_v11, %v1320_v9 }
 0x201   : > { %v715_v14 = vpack.c.bf16 %v1326_v12, %v1322_v10 }
 0x203   : > { %1173 = vmatprep.mubr.bf16.mxu1 %v715_v14 }
 0x204   : > { %1174 = vmatmul.mubr.bf16.vlgmr.msra.gmra.mrb[16].mxu1 %v716_v13 }
 0x2bf   : > { %v1163_v16 = vpop.f32.mrb[16].mxu0 }
 0x2c0   : > { %v831_v17 = vadd.f32 %v1163_v16, %v1625_v15  ;;  %v822_v18 = vpop.f32.mrb[17].mxu0 }
 0x2c1   : > { %v823_v19 = vadd.f32 %v1625_v15, %v822_v18  ;;  %v1164_v20 = vpop.f32.mrb[18].mxu0 }
 0x2c2   : > { %1327 = vtanh.f32 %v831_v17  ;;  %v834_v21 = vadd.f32 %v1164_v20, %v1625_v15  ;;  %v825_v22 = vpop.f32.mrb[19].mxu0 }
 0x2c3   : > { %1329 = vtanh.f32 %v823_v19  ;;  %v826_v23 = vadd.f32 %v1625_v15, %v825_v22 }
 0x2c4   : > { %1331 = vtanh.f32 %v834_v21 }
 0x2c5   : > { %1333 = vtanh.f32 %v826_v23 }
 0x2c7   : > { %v1167_v24 = vpop.f32.mrb[20].mxu0 }
 0x2c8   : > { %v847_v25 = vadd.f32 %v1167_v24, %v1625_v15  ;;  %v838_v26 = vpop.f32.mrb[21].mxu0 }
 0x2c9   : > { %v839_v27 = vadd.f32 %v1625_v15, %v838_v26  ;;  %v1168_v28 = vpop.f32.mrb[22].mxu0 }
 0x2ca   : > { %1335 = vtanh.f32 %v847_v25  ;;  %v850_v29 = vadd.f32 %v1168_v28, %v1625_v15  ;;  %v841_v30 = vpop.f32.mrb[23].mxu0 }
 0x2cb   : > { %1337 = vtanh.f32 %v839_v27  ;;  %v842_v31 = vadd.f32 %v1625_v15, %v841_v30 }
 0x2cc   : > { %v1328_v32 = vpop.eup %1327  ;;  %1339 = vtanh.f32 %v850_v29 }
 0x2cd   : > { %v1330_v33 = vpop.eup %1329  ;;  %903 = vst [vmem:[%s1638_s29 + $0x10] sm:$0xff] %v1328_v32  ;;  %1341 = vtanh.f32 %v842_v31 }
 0x2ce   : > { %v1332_v34 = vpop.eup %1331  ;;  %901 = vst [vmem:[%s1638_s29] sm:$0xff] %v1330_v33 }
 0x2cf   : > { %v1334_v35 = vpop.eup %1333  ;;  %904 = vst [vmem:[%s1638_s29 + $0x18] sm:$0xff] %v1332_v34  ;;  %v1171_v36 = vpop.f32.mrb[24].mxu0 }
 0x2d0   : > { %902 = vst [vmem:[%s1638_s29 + $0x8] sm:$0xff] %v1334_v35  ;;  %v863_v37 = vadd.f32 %v1171_v36, %v1625_v15  ;;  %v854_v38 = vpop.f32.mrb[25].mxu0 }
 0x2d1   : > { %v855_v39 = vadd.f32 %v1625_v15, %v854_v38  ;;  %v1172_v40 = vpop.f32.mrb[26].mxu0 }
 0x2d2   : > { %1343 = vtanh.f32 %v863_v37  ;;  %v866_v41 = vadd.f32 %v1172_v40, %v1625_v15  ;;  %v857_v42 = vpop.f32.mrb[27].mxu0 }
 0x2d3   : > { %1345 = vtanh.f32 %v855_v39  ;;  %v858_v43 = vadd.f32 %v1625_v15, %v857_v42 }
 0x2d4   : > { %v1336_v44 = vpop.eup %1335  ;;  %1347 = vtanh.f32 %v866_v41 }
 0x2d5   : > { %v1338_v45 = vpop.eup %1337  ;;  %907 = vst [vmem:[%s1638_s29 + $0x30] sm:$0xff] %v1336_v44  ;;  %1349 = vtanh.f32 %v858_v43 }
 0x2d6   : > { %v1340_v46 = vpop.eup %1339  ;;  %905 = vst [vmem:[%s1638_s29 + $0x20] sm:$0xff] %v1338_v45 }
 0x2d7   : > { %v1342_v47 = vpop.eup %1341  ;;  %908 = vst [vmem:[%s1638_s29 + $0x38] sm:$0xff] %v1340_v46  ;;  %v1175_v48 = vpop.f32.mrb[16].mxu1 }
 0x2d8   : > { %906 = vst [vmem:[%s1638_s29 + $0x28] sm:$0xff] %v1342_v47  ;;  %v879_v49 = vadd.f32 %v1175_v48, %v1625_v15  ;;  %v870_v50 = vpop.f32.mrb[17].mxu1 }
 0x2d9   : > { %v871_v51 = vadd.f32 %v1625_v15, %v870_v50  ;;  %v1176_v52 = vpop.f32.mrb[18].mxu1 }
 0x2da   : > { %1351 = vtanh.f32 %v879_v49  ;;  %v882_v53 = vadd.f32 %v1176_v52, %v1625_v15  ;;  %v873_v54 = vpop.f32.mrb[19].mxu1 }
 0x2db   : > { %1353 = vtanh.f32 %v871_v51  ;;  %v874_v55 = vadd.f32 %v1625_v15, %v873_v54 }
 0x2dc   : > { %v1344_v56 = vpop.eup %1343  ;;  %1355 = vtanh.f32 %v882_v53 }
 0x2dd   : > { %v1346_v57 = vpop.eup %1345  ;;  %911 = vst [vmem:[%s1638_s29 + $0x50] sm:$0xff] %v1344_v56  ;;  %1357 = vtanh.f32 %v874_v55 }
 0x2de   : > { %v1348_v58 = vpop.eup %1347  ;;  %909 = vst [vmem:[%s1638_s29 + $0x40] sm:$0xff] %v1346_v57 }
 0x2df   : > { %v1350_v59 = vpop.eup %1349  ;;  %912 = vst [vmem:[%s1638_s29 + $0x58] sm:$0xff] %v1348_v58 }
 0x2e0   : > { %910 = vst [vmem:[%s1638_s29 + $0x48] sm:$0xff] %v1350_v59 }
 0x2e4   : > { %v1352_v60 = vpop.eup %1351 }
 0x2e5   : > { %v1354_v61 = vpop.eup %1353  ;;  %915 = vst [vmem:[%s1638_s29 + $0x70] sm:$0xff] %v1352_v60 }
 0x2e6   : > { %v1356_v62 = vpop.eup %1355  ;;  %913 = vst [vmem:[%s1638_s29 + $0x60] sm:$0xff] %v1354_v61 }
 0x2e7   : > { %v1358_v63 = vpop.eup %1357  ;;  %916 = vst [vmem:[%s1638_s29 + $0x78] sm:$0xff] %v1356_v62 }
 0x2e8   : > { %914 = vst [vmem:[%s1638_s29 + $0x68] sm:$0xff] %v1358_v63 }
 0x2e9   : > { %1372 = shalt.err (!%p1369_p3)
}
 0x2ea   : > { %s1373_s20 = scalar_lea.hbm %s1666_s15, 2048  ;;  %s1377_s23 = scalar_lea.hbm %s1723_s7, 4096 }
 0x2eb   : > { %p1374_p4 = scmp.ne.s32.totalorder %s1666_s15, %s1373_s20  ;;  %p1378_p9 = scmp.lt.u32.totalorder %s1666_s15, %s1723_s7 }
 0x2ec   : > { %p1379_p10 = scmp.lt.u32.totalorder %s1377_s23, %s1373_s20  ;;  %p1381_p12 = scmp.lt.u32.totalorder %s1373_s20, %s1666_s15 }
 0x2ed   : > { %p1375_p7 = pnand %p1374_p4, %p1504_p5 }
 0x2ee   : > { %p1380_p11 = por %p1379_p10, %p1378_p9 }
 0x2ef   : > { %p1376_p8 = pneg %p1375_p7 }
 0x2f0   : > { %p1382_p13 = por %p1381_p12, %p1380_p11 }
 0x2f2   : > { %p1383_p0 = pnand %p1382_p13, %p1376_p8 }
 0x2f4   : > { %1386 = shalt.err (!%p1383_p0)
}
 0x2f5   : > { %s1424_s13 = smov 128   ;;  %s1425_s14 = smov 8  }
 0x2f6   : > { %1194 = dma.vmem_to_hbm [thread:$0]  (%p1504_p5), %s1668_s9, 2048, %s1666_s15, %s1675_s28, %s1424_s13, %s1424_s13, %s1425_s14  }
 0x2f7 PF: > { %p1200_p1 = scmp.ge.s32.totalorder %s1421_s27, 2  ;;  %s946_s16 = sand.u32 1, %s1409_s24  }
 0x2f8   : > { %s947_s18 = scalar_lea.sflag [#allocation3], %s946_s16 }
 0x2f9   : > { %p1197_p2 = pnand %p1200_p1, %p1508_p6 }
 0x2fb   : > { %1404 = dma.done.wait (!%p1197_p2), %s947_s18, 2048  }
 0x2fc   : > { %1406 = vsyncadd (!%p1197_p2), %s947_s18, 4294965248  ;;  %p17_p3 = scmp.ge.s32.totalorder %s1491_s30, 4   ;;  %s1726_s24 = smov %s1413_s25 }
 0x2fd   : > { %s1727_s25 = smov %s1417_s26  ;;  %s1728_s26 = smov %s1502_s10 }
 0x2fe   : > { %s1729_s27 = smov %s1491_s30  ;;  %19 = sbr.rel (!%p17_p3) target bundleno = 3 (0x3), region = 83 }
 0x305   :  { %952 = vsyncpa [#allocation3], 1 }
 0x306   :  { %954 = vsyncpa [#allocation3 + $0x1], 1 }

</bundles_post_ra>
